<compile_context>
chip_gen: v5e
topology: v5e:2x2
jax: 0.10.0
libtpu: 0.0.40
codegen_flags: <defaults>
</compile_context>

<pallas_src>
import functools
import math

import jax
import jax.numpy as jnp
import numpy as np
from jax import lax
from jax.experimental import pallas as pl
from jax.experimental.pallas import tpu as pltpu


def pwca_kernel(x1_ref, x2_ref, wq_ref, wkv_ref, wo_ref, *refs,
                num_heads, d_k, block_q, seq_len, store_attn):
    """Grid = (batch, num_q_tiles).

    x1_ref, x2_ref : (1, S, D)   full per-batch activations (VMEM)
    wq_ref         : (D, D)      query projection
    wkv_ref        : (D, 2D)     packed [W_k | W_v] projection
    wo_ref         : (D, D)      output projection
    out_ref        : (1, tq, D)
    attn_ref       : (1, H, tq, 2S)     (only when store_attn)
    kv_scr         : (2S, 2D)    packed [K | V] scratch, persists across q tiles
    ctx_scr        : (tq, D)     f32 context scratch
    """
    if store_attn:
        out_ref, attn_ref, kv_scr, ctx_scr = refs
    else:
        out_ref, kv_scr, ctx_scr = refs
        attn_ref = None

    qi = pl.program_id(1)
    d_model = num_heads * d_k
    inv_scale = 1.0 / math.sqrt(d_k)
    cdtype = x1_ref.dtype  # native compute dtype for MXU inputs

    # K/V of the contaminated sequence [x1; x2]: compute once per batch
    # element (first query tile) directly into the packed scratch -- no
    # concat of x1/x2 and no column-slice copies of the projection result.
    @pl.when(qi == 0)
    def _():
        kv_scr[pl.ds(0, seq_len), :] = jnp.dot(
            x1_ref[0], wkv_ref[...],
            preferred_element_type=jnp.float32).astype(kv_scr.dtype)
        kv_scr[pl.ds(seq_len, seq_len), :] = jnp.dot(
            x2_ref[0], wkv_ref[...],
            preferred_element_type=jnp.float32).astype(kv_scr.dtype)

    # Q projection for this query tile, 1/sqrt(d_k) folded in once.
    q_start = pl.multiple_of(qi * block_q, block_q)
    xq = x1_ref[0, pl.ds(q_start, block_q), :]                        # (tq, D)
    q = (jnp.dot(xq, wq_ref[...], preferred_element_type=jnp.float32)
         * inv_scale).astype(cdtype)                                  # (tq, D)

    for h in range(num_heads):
        lo = h * d_k
        qh = q[:, lo:lo + d_k]                                        # (tq, dk)
        kh = kv_scr[:, lo:lo + d_k]                                   # (2S, dk)
        vh = kv_scr[:, d_model + lo:d_model + lo + d_k]               # (2S, dk)

        # Contract last dims directly (no explicit (d_k, 2S) transpose).
        scores = lax.dot_general(
            qh, kh, (((1,), (1,)), ((), ())),
            preferred_element_type=jnp.float32)                       # (tq, 2S)

        m = jnp.max(scores, axis=-1, keepdims=True)
        p = jnp.exp(scores - m)
        denom = jnp.sum(p, axis=-1, keepdims=True)
        r = pl.reciprocal(denom, approx=True)
        r = r * (2.0 - denom * r)           # one Newton step -> exact softmax
        probs = p * r                                                 # f32

        # TODO(synk): attention dropout omitted (identity in eval mode).
        if store_attn:
            attn_ref[0, h] = probs.astype(attn_ref.dtype)

        # Bound live ranges: write each head's context into the f32 scratch.
        ctx_scr[:, lo:lo + d_k] = jnp.dot(
            probs.astype(cdtype), vh, preferred_element_type=jnp.float32)

    # Apply W_o with a single full-D-contraction matmul.
    out_ref[0] = jnp.dot(ctx_scr[...].astype(cdtype), wo_ref[...],
                         preferred_element_type=jnp.float32).astype(out_ref.dtype)


def _vmem_capacity_bytes():
    try:
        return int(pltpu.get_tpu_info().vmem_capacity_bytes)
    except Exception:
        return 64 << 20  # conservative (v7x per-core VMEM)


def _vmem_estimate(seq_len, d_model, num_heads, block_q, itemsize,
                   store_attn, x_buffers):
    """Rough VMEM residency estimate including in-kernel f32 temporaries."""
    s2 = 2 * seq_len
    est = 0
    est += x_buffers * 2 * seq_len * d_model * itemsize      # x1 + x2 blocks
    est += 4 * d_model * d_model * itemsize                  # wq + wkv + wo (Buffered(1))
    est += 2 * block_q * d_model * itemsize                  # out block (double-buffered)
    if store_attn:
        est += 2 * num_heads * block_q * s2 * itemsize       # attn block (double-buffered)
    est += s2 * 2 * d_model * itemsize                       # packed K|V scratch
    est += block_q * d_model * 4                             # ctx scratch (f32)
    # in-kernel f32 temporaries
    est += 2 * seq_len * 2 * d_model * 4                     # (S, 2D) kv projection at qi==0
    est += 4 * block_q * s2 * 4                              # scores / exp / probs buffers
    est += block_q * s2 * itemsize                           # probs cast for PV matmul
    est += 2 * block_q * d_model * 4                         # q (f32) + cast
    return est


def _pick_block_q(seq_len, d_model, num_heads, itemsize, store_attn, budget,
                  x_buffers, max_target=512):
    """Largest sublane-aligned divisor of seq_len (<= max_target) fitting VMEM."""
    sublane = 8 if itemsize >= 4 else 16
    cands = [t for t in range(1, seq_len + 1)
             if seq_len % t == 0 and (t == seq_len or t % sublane == 0)]
    cands.sort(reverse=True)
    for t in cands:
        if t > max_target:
            continue
        if _vmem_estimate(seq_len, d_model, num_heads, t, itemsize,
                          store_attn, x_buffers) <= budget:
            return t
    return cands[-1]  # smallest well-formed tile; compiler may spill


def pairwise_cross_attention(x1, x2, wq, wk, wv, wo, *, num_heads,
                             block_q=None, return_attention=True):
    """x1, x2: [B, S, D]; w*: [D, D] ([in, out]).

    Returns (output, attn) when return_attention else output only.
    NOTE: prefer S such that 2*S is a multiple of 128 (lane-dense attention
    writes) and S a multiple of 8.
    """
    batch, seq_len, d_model = x1.shape
    assert d_model % num_heads == 0
    d_k = d_model // num_heads
    itemsize = x1.dtype.itemsize
    sublane = 8 if itemsize >= 4 else 16

    cap = _vmem_capacity_bytes()
    budget = max(cap - (8 << 20), 32 << 20)        # leave compiler headroom
    small_vmem = cap <= (64 << 20)                 # v7x-class: 64 MiB / core
    x_buffers = 2 if small_vmem else 4             # Buffered(1) x1/x2 on small VMEM

    if block_q is None:
        block_q = _pick_block_q(seq_len, d_model, num_heads, itemsize,
                                return_attention, budget, x_buffers)
    assert seq_len % block_q == 0
    assert block_q == seq_len or block_q % sublane == 0, (
        "block_q must be the full seq_len or a multiple of the sublane tile")
    num_q_tiles = seq_len // block_q

    # Pack K/V projection weights once (one fat matmul per source sequence).
    wkv = jnp.concatenate([wk, wv], axis=1)                           # (D, 2D)

    kernel = functools.partial(pwca_kernel, num_heads=num_heads, d_k=d_k,
                               block_q=block_q, seq_len=seq_len,
                               store_attn=return_attention)

    est = _vmem_estimate(seq_len, d_model, num_heads, block_q, itemsize,
                         return_attention, x_buffers)
    vmem_limit = int(min(budget, max(32 << 20, int(est * 1.25))))

    # x1/x2 index maps change only once per batch; on small-VMEM chips drop
    # their double buffer (one exposed S*D DMA per batch is well amortized).
    x_kwargs = dict(pipeline_mode=pl.Buffered(1)) if small_vmem else {}
    in_specs = [
        pl.BlockSpec((1, seq_len, d_model), lambda b, qi: (b, 0, 0), **x_kwargs),
        pl.BlockSpec((1, seq_len, d_model), lambda b, qi: (b, 0, 0), **x_kwargs),
        # Weights: constant index map -> double-buffering buys nothing.
        pl.BlockSpec((d_model, d_model), lambda b, qi: (0, 0),
                     pipeline_mode=pl.Buffered(1)),
        pl.BlockSpec((d_model, 2 * d_model), lambda b, qi: (0, 0),
                     pipeline_mode=pl.Buffered(1)),
        pl.BlockSpec((d_model, d_model), lambda b, qi: (0, 0),
                     pipeline_mode=pl.Buffered(1)),
    ]

    out_shapes = [jax.ShapeDtypeStruct((batch, seq_len, d_model), x1.dtype)]
    out_specs = [pl.BlockSpec((1, block_q, d_model), lambda b, qi: (b, qi, 0))]
    if return_attention:
        out_shapes.append(jax.ShapeDtypeStruct(
            (batch, num_heads, seq_len, 2 * seq_len), x1.dtype))
        out_specs.append(pl.BlockSpec((1, num_heads, block_q, 2 * seq_len),
                                      lambda b, qi: (b, 0, qi, 0)))

    results = pl.pallas_call(
        kernel,
        out_shape=tuple(out_shapes),
        grid_spec=pltpu.PrefetchScalarGridSpec(
            num_scalar_prefetch=0,
            grid=(batch, num_q_tiles),
            in_specs=in_specs,
            out_specs=out_specs,
            scratch_shapes=[
                pltpu.VMEM((2 * seq_len, 2 * d_model), x1.dtype),   # packed K|V
                pltpu.VMEM((block_q, d_model), jnp.float32),        # ctx (f32)
            ],
        ),
        compiler_params=pltpu.CompilerParams(
            dimension_semantics=("parallel", "arbitrary"),
            vmem_limit_bytes=vmem_limit),
    )(x1, x2, wq, wkv, wo)

    if return_attention:
        out, attn = results
        return out, attn
    (out,) = results
    return out


def pwca_reference(x1, x2, wq, wk, wv, wo, *, num_heads):
    """Pure-JAX reference mirroring the PyTorch forward (dropout = identity)."""
    batch, seq_len, d_model = x1.shape
    d_k = d_model // num_heads
    scale = math.sqrt(d_k)

    def split_heads(t):  # [B, S, D] -> [B, H, S, dk]
        return t.reshape(batch, seq_len, num_heads, d_k).transpose(0, 2, 1, 3)

    q1 = split_heads(x1 @ wq)
    k1 = split_heads(x1 @ wk)
    v1 = split_heads(x1 @ wv)
    k2 = split_heads(x2 @ wk)
    v2 = split_heads(x2 @ wv)
    k_comb = jnp.concatenate([k1, k2], axis=-2)      # [B, H, 2S, dk]
    v_comb = jnp.concatenate([v1, v2], axis=-2)
    scores = jnp.einsum("bhqd,bhkd->bhqk", q1, k_comb) / scale
    attn = jax.nn.softmax(scores, axis=-1)
    ctx = jnp.einsum("bhqk,bhkd->bhqd", attn, v_comb)
    ctx = ctx.transpose(0, 2, 1, 3).reshape(batch, seq_len, d_model)
    out = ctx @ wo
    return out, attn


if __name__ == "__main__":
    def run_case(batch, seq_len, d_model, num_heads, block_q=None):
        key = jax.random.PRNGKey(0)
        ks = jax.random.split(key, 6)
        x1 = jax.random.normal(ks[0], (batch, seq_len, d_model), jnp.float32)
        x2 = jax.random.normal(ks[1], (batch, seq_len, d_model), jnp.float32)
        s = 1.0 / math.sqrt(d_model)
        wq = jax.random.normal(ks[2], (d_model, d_model), jnp.float32) * s
        wk = jax.random.normal(ks[3], (d_model, d_model), jnp.float32) * s
        wv = jax.random.normal(ks[4], (d_model, d_model), jnp.float32) * s
        wo = jax.random.normal(ks[5], (d_model, d_model), jnp.float32) * s

        out, attn = pairwise_cross_attention(
            x1, x2, wq, wk, wv, wo, num_heads=num_heads, block_q=block_q)
        jax.block_until_ready(out)
        jax.block_until_ready(attn)

        out_r, attn_r = pwca_reference(x1, x2, wq, wk, wv, wo,
                                       num_heads=num_heads)
        np.testing.assert_allclose(np.asarray(out), np.asarray(out_r),
                                   rtol=1e-2, atol=1e-2)
        np.testing.assert_allclose(np.asarray(attn), np.asarray(attn_r),
                                   rtol=1e-2, atol=1e-2)
        assert out.shape == (batch, seq_len, d_model)
        assert attn.shape == (batch, num_heads, seq_len, 2 * seq_len)

        # Attention-free fast path (skips the O(B*H*S*2S) HBM writes).
        out_only = pairwise_cross_attention(
            x1, x2, wq, wk, wv, wo, num_heads=num_heads, block_q=block_q,
            return_attention=False)
        jax.block_until_ready(out_only)
        np.testing.assert_allclose(np.asarray(out_only), np.asarray(out_r),
                                   rtol=1e-2, atol=1e-2)

    # Single query tile per batch element.
    run_case(batch=2, seq_len=8, d_model=64, num_heads=4)
    # Multiple query tiles (exercises K/V-scratch reuse across q tiles).
    run_case(batch=2, seq_len=16, d_model=64, num_heads=4, block_q=8)

    print("KERNEL_OK")
</pallas_src>

<mosaic_0001>
module attributes {stable_mosaic.version = 11 : i64} {
  func.func @pwca_kernel(%arg0: i32, %arg1: i32, %arg2: memref<1x8x64xf32, #tpu.memory_space<vmem>>, %arg3: memref<1x8x64xf32, #tpu.memory_space<vmem>>, %arg4: memref<64x64xf32, #tpu.memory_space<vmem>>, %arg5: memref<64x128xf32, #tpu.memory_space<vmem>>, %arg6: memref<64x64xf32, #tpu.memory_space<vmem>>, %arg7: memref<1x8x64xf32, #tpu.memory_space<vmem>>, %arg8: memref<1x4x8x16xf32, #tpu.memory_space<vmem>>, %arg9: memref<16x128xf32, #tpu.memory_space<vmem>>, %arg10: memref<8x64xf32, #tpu.memory_space<vmem>>) attributes {dimension_semantics = [#tpu.dimension_semantics<parallel>, #tpu.dimension_semantics<arbitrary>], iteration_bounds = array<i64: 2, 1>, scalar_prefetch = 0 : i64, scratch_operands = 2 : i64, tpu.core_type = #tpu.core_type<tc>, window_params = [{pipeline_mode = #tpu.pipeline_mode<synchronous>, transform_indices = @transform_0, window_bounds = array<i64: 1, 8, 64>}, {pipeline_mode = #tpu.pipeline_mode<synchronous>, transform_indices = @transform_1, window_bounds = array<i64: 1, 8, 64>}, {pipeline_mode = #tpu.pipeline_mode<synchronous>, transform_indices = @transform_2, window_bounds = array<i64: 64, 64>}, {pipeline_mode = #tpu.pipeline_mode<synchronous>, transform_indices = @transform_3, window_bounds = array<i64: 64, 128>}, {pipeline_mode = #tpu.pipeline_mode<synchronous>, transform_indices = @transform_4, window_bounds = array<i64: 64, 64>}, {transform_indices = @transform_5, window_bounds = array<i64: 1, 8, 64>}, {transform_indices = @transform_6, window_bounds = array<i64: 1, 4, 8, 16>}]} {
    %c0_i32 = arith.constant 0 : i32
    %0 = arith.cmpi eq, %arg1, %c0_i32 : i32
    %1 = arith.extui %0 : i1 to i32
    %c0_i32_0 = arith.constant 0 : i32
    %2 = arith.cmpi ne, %1, %c0_i32_0 : i32
    scf.if %2 {
      %c0_63 = arith.constant 0 : index
      %c0_64 = arith.constant 0 : index
      %c0_65 = arith.constant 0 : index
      %110 = vector.load %arg2[%c0_63, %c0_64, %c0_65] : memref<1x8x64xf32, #tpu.memory_space<vmem>>, vector<1x8x64xf32>
      %111 = vector.shape_cast %110 : vector<1x8x64xf32> to vector<8x64xf32>
      %c0_66 = arith.constant 0 : index
      %c0_67 = arith.constant 0 : index
      %112 = vector.load %arg5[%c0_66, %c0_67] : memref<64x128xf32, #tpu.memory_space<vmem>>, vector<64x128xf32>
      %cst_68 = arith.constant dense<0.000000e+00> : vector<8x128xf32>
      %113 = tpu.matmul %111, %112, %cst_68 {dimension_numbers = #tpu.dot_dimension_numbers<[1], [0], [0], [1], [0, 0, 1, 1], [], []>} : vector<8x64xf32>, vector<64x128xf32>, vector<8x128xf32> -> vector<8x128xf32>
      %c0_69 = arith.constant 0 : index
      %c0_70 = arith.constant 0 : index
      %114 = vector.load %arg9[%c0_69, %c0_70] : memref<16x128xf32, #tpu.memory_space<vmem>>, vector<8x128xf32>
      tpu.vector_store %arg9[%c0_69, %c0_70], %113 {strides = array<i32>} : memref<16x128xf32, #tpu.memory_space<vmem>>, vector<8x128xf32>,
      %c0_71 = arith.constant 0 : index
      %c0_72 = arith.constant 0 : index
      %c0_73 = arith.constant 0 : index
      %115 = vector.load %arg3[%c0_71, %c0_72, %c0_73] : memref<1x8x64xf32, #tpu.memory_space<vmem>>, vector<1x8x64xf32>
      %116 = vector.shape_cast %115 : vector<1x8x64xf32> to vector<8x64xf32>
      %c0_74 = arith.constant 0 : index
      %c0_75 = arith.constant 0 : index
      %117 = vector.load %arg5[%c0_74, %c0_75] : memref<64x128xf32, #tpu.memory_space<vmem>>, vector<64x128xf32>
      %cst_76 = arith.constant dense<0.000000e+00> : vector<8x128xf32>
      %118 = tpu.matmul %116, %117, %cst_76 {dimension_numbers = #tpu.dot_dimension_numbers<[1], [0], [0], [1], [0, 0, 1, 1], [], []>} : vector<8x64xf32>, vector<64x128xf32>, vector<8x128xf32> -> vector<8x128xf32>
      %c8 = arith.constant 8 : index
      %c0_77 = arith.constant 0 : index
      %119 = vector.load %arg9[%c8, %c0_77] : memref<16x128xf32, #tpu.memory_space<vmem>>, vector<8x128xf32>
      tpu.vector_store %arg9[%c8, %c0_77], %118 {strides = array<i32>} : memref<16x128xf32, #tpu.memory_space<vmem>>, vector<8x128xf32>,
    } else {
    }
    %c8_i32 = arith.constant 8 : i32
    %3 = arith.muli %arg1, %c8_i32 : i32
    %4 = tpu.assume_multiple %3, 8 : i32
    %c0 = arith.constant 0 : index
    %5 = arith.index_cast %4 : i32 to index
    %c0_1 = arith.constant 0 : index
    %6 = vector.load %arg2[%c0, %5, %c0_1] : memref<1x8x64xf32, #tpu.memory_space<vmem>>, vector<1x8x64xf32>
    %7 = vector.shape_cast %6 : vector<1x8x64xf32> to vector<8x64xf32>
    %c0_2 = arith.constant 0 : index
    %c0_3 = arith.constant 0 : index
    %8 = vector.load %arg4[%c0_2, %c0_3] : memref<64x64xf32, #tpu.memory_space<vmem>>, vector<64x64xf32>
    %cst = arith.constant dense<0.000000e+00> : vector<8x64xf32>
    %9 = tpu.matmul %7, %8, %cst {dimension_numbers = #tpu.dot_dimension_numbers<[1], [0], [0], [1], [0, 0, 1, 1], [], []>} : vector<8x64xf32>, vector<64x64xf32>, vector<8x64xf32> -> vector<8x64xf32>
    %cst_4 = arith.constant 2.500000e-01 : f32
    %10 = vector.broadcast %cst_4 : f32 to vector<8x64xf32>
    %11 = arith.mulf %9, %10 : vector<8x64xf32>
    %12 = vector.extract_strided_slice %11 {offsets = [0, 0], sizes = [8, 16], strides = [1, 1]} : vector<8x64xf32> to vector<8x16xf32>
    %c0_5 = arith.constant 0 : index
    %c0_6 = arith.constant 0 : index
    %13 = vector.load %arg9[%c0_5, %c0_6] : memref<16x128xf32, #tpu.memory_space<vmem>>, vector<16x16xf32>
    %c0_7 = arith.constant 0 : index
    %c64 = arith.constant 64 : index
    %14 = vector.load %arg9[%c0_7, %c64] : memref<16x128xf32, #tpu.memory_space<vmem>>, vector<16x16xf32>
    %cst_8 = arith.constant dense<0.000000e+00> : vector<8x16xf32>
    %15 = tpu.matmul %12, %13, %cst_8 {dimension_numbers = #tpu.dot_dimension_numbers<[1], [1], [0], [0], [0, 0, 1, 0], [], []>} : vector<8x16xf32>, vector<16x16xf32>, vector<8x16xf32> -> vector<8x16xf32>
    %cst_9 = arith.constant dense<0xFF800000> : vector<8xf32>
    %16 = vector.multi_reduction <maximumf>, %15, %cst_9 [1] : vector<8x16xf32> to vector<8xf32>
    %17 = vector.shape_cast %16 : vector<8xf32> to vector<8x1xf32>
    %18 = vector.broadcast %17 : vector<8x1xf32> to vector<8x16xf32>
    %19 = arith.subf %15, %18 : vector<8x16xf32>
    %20 = math.exp %19 : vector<8x16xf32>
    %cst_10 = arith.constant dense<0.000000e+00> : vector<8xf32>
    %21 = vector.multi_reduction <add>, %20, %cst_10 [1] : vector<8x16xf32> to vector<8xf32>
    %22 = vector.shape_cast %21 : vector<8xf32> to vector<8x1xf32>
    %23 = tpu.reciprocal %22 {approx = true} : vector<8x1xf32> -> vector<8x1xf32>
    %24 = arith.mulf %22, %23 : vector<8x1xf32>
    %cst_11 = arith.constant 2.000000e+00 : f32
    %25 = vector.broadcast %cst_11 : f32 to vector<8x1xf32>
    %26 = arith.subf %25, %24 : vector<8x1xf32>
    %27 = arith.mulf %23, %26 : vector<8x1xf32>
    %28 = vector.broadcast %27 : vector<8x1xf32> to vector<8x16xf32>
    %29 = arith.mulf %20, %28 : vector<8x16xf32>
    %c0_12 = arith.constant 0 : index
    %c0_13 = arith.constant 0 : index
    %c0_14 = arith.constant 0 : index
    %c0_15 = arith.constant 0 : index
    %30 = vector.load %arg8[%c0_12, %c0_13, %c0_14, %c0_15] : memref<1x4x8x16xf32, #tpu.memory_space<vmem>>, vector<1x1x8x16xf32>
    %31 = vector.shape_cast %30 : vector<1x1x8x16xf32> to vector<8x16xf32>
    %32 = vector.shape_cast %29 : vector<8x16xf32> to vector<1x1x8x16xf32>
    tpu.vector_store %arg8[%c0_12, %c0_13, %c0_14, %c0_15], %32 {strides = array<i32>} : memref<1x4x8x16xf32, #tpu.memory_space<vmem>>, vector<1x1x8x16xf32>,
    %cst_16 = arith.constant dense<0.000000e+00> : vector<8x16xf32>
    %33 = tpu.matmul %29, %14, %cst_16 {dimension_numbers = #tpu.dot_dimension_numbers<[1], [0], [0], [1], [0, 0, 1, 1], [], []>} : vector<8x16xf32>, vector<16x16xf32>, vector<8x16xf32> -> vector<8x16xf32>
    %c0_17 = arith.constant 0 : index
    %c0_18 = arith.constant 0 : index
    %34 = vector.load %arg10[%c0_17, %c0_18] : memref<8x64xf32, #tpu.memory_space<vmem>>, vector<8x16xf32>
    tpu.vector_store %arg10[%c0_17, %c0_18], %33 {strides = array<i32>} : memref<8x64xf32, #tpu.memory_space<vmem>>, vector<8x16xf32>,
    %35 = vector.extract_strided_slice %11 {offsets = [0, 16], sizes = [8, 16], strides = [1, 1]} : vector<8x64xf32> to vector<8x16xf32>
    %c0_19 = arith.constant 0 : index
    %c16 = arith.constant 16 : index
    %36 = vector.load %arg9[%c0_19, %c16] : memref<16x128xf32, #tpu.memory_space<vmem>>, vector<16x16xf32>
    %c0_20 = arith.constant 0 : index
    %c80 = arith.constant 80 : index
    %37 = vector.load %arg9[%c0_20, %c80] : memref<16x128xf32, #tpu.memory_space<vmem>>, vector<16x16xf32>
    %cst_21 = arith.constant dense<0.000000e+00> : vector<8x16xf32>
    %38 = tpu.matmul %35, %36, %cst_21 {dimension_numbers = #tpu.dot_dimension_numbers<[1], [1], [0], [0], [0, 0, 1, 0], [], []>} : vector<8x16xf32>, vector<16x16xf32>, vector<8x16xf32> -> vector<8x16xf32>
    %cst_22 = arith.constant dense<0xFF800000> : vector<8xf32>
    %39 = vector.multi_reduction <maximumf>, %38, %cst_22 [1] : vector<8x16xf32> to vector<8xf32>
    %40 = vector.shape_cast %39 : vector<8xf32> to vector<8x1xf32>
    %41 = vector.broadcast %40 : vector<8x1xf32> to vector<8x16xf32>
    %42 = arith.subf %38, %41 : vector<8x16xf32>
    %43 = math.exp %42 : vector<8x16xf32>
    %cst_23 = arith.constant dense<0.000000e+00> : vector<8xf32>
    %44 = vector.multi_reduction <add>, %43, %cst_23 [1] : vector<8x16xf32> to vector<8xf32>
    %45 = vector.shape_cast %44 : vector<8xf32> to vector<8x1xf32>
    %46 = tpu.reciprocal %45 {approx = true} : vector<8x1xf32> -> vector<8x1xf32>
    %47 = arith.mulf %45, %46 : vector<8x1xf32>
    %cst_24 = arith.constant 2.000000e+00 : f32
    %48 = vector.broadcast %cst_24 : f32 to vector<8x1xf32>
    %49 = arith.subf %48, %47 : vector<8x1xf32>
    %50 = arith.mulf %46, %49 : vector<8x1xf32>
    %51 = vector.broadcast %50 : vector<8x1xf32> to vector<8x16xf32>
    %52 = arith.mulf %43, %51 : vector<8x16xf32>
    %c0_25 = arith.constant 0 : index
    %c1 = arith.constant 1 : index
    %c0_26 = arith.constant 0 : index
    %c0_27 = arith.constant 0 : index
    %53 = vector.load %arg8[%c0_25, %c1, %c0_26, %c0_27] : memref<1x4x8x16xf32, #tpu.memory_space<vmem>>, vector<1x1x8x16xf32>
    %54 = vector.shape_cast %53 : vector<1x1x8x16xf32> to vector<8x16xf32>
    %55 = vector.shape_cast %52 : vector<8x16xf32> to vector<1x1x8x16xf32>
    tpu.vector_store %arg8[%c0_25, %c1, %c0_26, %c0_27], %55 {strides = array<i32>} : memref<1x4x8x16xf32, #tpu.memory_space<vmem>>, vector<1x1x8x16xf32>,
    %cst_28 = arith.constant dense<0.000000e+00> : vector<8x16xf32>
    %56 = tpu.matmul %52, %37, %cst_28 {dimension_numbers = #tpu.dot_dimension_numbers<[1], [0], [0], [1], [0, 0, 1, 1], [], []>} : vector<8x16xf32>, vector<16x16xf32>, vector<8x16xf32> -> vector<8x16xf32>
    %c0_29 = arith.constant 0 : index
    %c16_30 = arith.constant 16 : index
    %57 = vector.load %arg10[%c0_29, %c16_30] : memref<8x64xf32, #tpu.memory_space<vmem>>, vector<8x16xf32>
    tpu.vector_store %arg10[%c0_29, %c16_30], %56 {strides = array<i32>} : memref<8x64xf32, #tpu.memory_space<vmem>>, vector<8x16xf32>,
    %58 = vector.extract_strided_slice %11 {offsets = [0, 32], sizes = [8, 16], strides = [1, 1]} : vector<8x64xf32> to vector<8x16xf32>
    %c0_31 = arith.constant 0 : index
    %c32 = arith.constant 32 : index
    %59 = vector.load %arg9[%c0_31, %c32] : memref<16x128xf32, #tpu.memory_space<vmem>>, vector<16x16xf32>
    %c0_32 = arith.constant 0 : index
    %c96 = arith.constant 96 : index
    %60 = vector.load %arg9[%c0_32, %c96] : memref<16x128xf32, #tpu.memory_space<vmem>>, vector<16x16xf32>
    %cst_33 = arith.constant dense<0.000000e+00> : vector<8x16xf32>
    %61 = tpu.matmul %58, %59, %cst_33 {dimension_numbers = #tpu.dot_dimension_numbers<[1], [1], [0], [0], [0, 0, 1, 0], [], []>} : vector<8x16xf32>, vector<16x16xf32>, vector<8x16xf32> -> vector<8x16xf32>
    %cst_34 = arith.constant dense<0xFF800000> : vector<8xf32>
    %62 = vector.multi_reduction <maximumf>, %61, %cst_34 [1] : vector<8x16xf32> to vector<8xf32>
    %63 = vector.shape_cast %62 : vector<8xf32> to vector<8x1xf32>
    %64 = vector.broadcast %63 : vector<8x1xf32> to vector<8x16xf32>
    %65 = arith.subf %61, %64 : vector<8x16xf32>
    %66 = math.exp %65 : vector<8x16xf32>
    %cst_35 = arith.constant dense<0.000000e+00> : vector<8xf32>
    %67 = vector.multi_reduction <add>, %66, %cst_35 [1] : vector<8x16xf32> to vector<8xf32>
    %68 = vector.shape_cast %67 : vector<8xf32> to vector<8x1xf32>
    %69 = tpu.reciprocal %68 {approx = true} : vector<8x1xf32> -> vector<8x1xf32>
    %70 = arith.mulf %68, %69 : vector<8x1xf32>
    %cst_36 = arith.constant 2.000000e+00 : f32
    %71 = vector.broadcast %cst_36 : f32 to vector<8x1xf32>
    %72 = arith.subf %71, %70 : vector<8x1xf32>
    %73 = arith.mulf %69, %72 : vector<8x1xf32>
    %74 = vector.broadcast %73 : vector<8x1xf32> to vector<8x16xf32>
    %75 = arith.mulf %66, %74 : vector<8x16xf32>
    %c0_37 = arith.constant 0 : index
    %c2 = arith.constant 2 : index
    %c0_38 = arith.constant 0 : index
    %c0_39 = arith.constant 0 : index
    %76 = vector.load %arg8[%c0_37, %c2, %c0_38, %c0_39] : memref<1x4x8x16xf32, #tpu.memory_space<vmem>>, vector<1x1x8x16xf32>
    %77 = vector.shape_cast %76 : vector<1x1x8x16xf32> to vector<8x16xf32>
    %78 = vector.shape_cast %75 : vector<8x16xf32> to vector<1x1x8x16xf32>
    tpu.vector_store %arg8[%c0_37, %c2, %c0_38, %c0_39], %78 {strides = array<i32>} : memref<1x4x8x16xf32, #tpu.memory_space<vmem>>, vector<1x1x8x16xf32>,
    %cst_40 = arith.constant dense<0.000000e+00> : vector<8x16xf32>
    %79 = tpu.matmul %75, %60, %cst_40 {dimension_numbers = #tpu.dot_dimension_numbers<[1], [0], [0], [1], [0, 0, 1, 1], [], []>} : vector<8x16xf32>, vector<16x16xf32>, vector<8x16xf32> -> vector<8x16xf32>
    %c0_41 = arith.constant 0 : index
    %c32_42 = arith.constant 32 : index
    %80 = vector.load %arg10[%c0_41, %c32_42] : memref<8x64xf32, #tpu.memory_space<vmem>>, vector<8x16xf32>
    tpu.vector_store %arg10[%c0_41, %c32_42], %79 {strides = array<i32>} : memref<8x64xf32, #tpu.memory_space<vmem>>, vector<8x16xf32>,
    %81 = vector.extract_strided_slice %11 {offsets = [0, 48], sizes = [8, 16], strides = [1, 1]} : vector<8x64xf32> to vector<8x16xf32>
    %c0_43 = arith.constant 0 : index
    %c48 = arith.constant 48 : index
    %82 = vector.load %arg9[%c0_43, %c48] : memref<16x128xf32, #tpu.memory_space<vmem>>, vector<16x16xf32>
    %c0_44 = arith.constant 0 : index
    %c112 = arith.constant 112 : index
    %83 = vector.load %arg9[%c0_44, %c112] : memref<16x128xf32, #tpu.memory_space<vmem>>, vector<16x16xf32>
    %cst_45 = arith.constant dense<0.000000e+00> : vector<8x16xf32>
    %84 = tpu.matmul %81, %82, %cst_45 {dimension_numbers = #tpu.dot_dimension_numbers<[1], [1], [0], [0], [0, 0, 1, 0], [], []>} : vector<8x16xf32>, vector<16x16xf32>, vector<8x16xf32> -> vector<8x16xf32>
    %cst_46 = arith.constant dense<0xFF800000> : vector<8xf32>
    %85 = vector.multi_reduction <maximumf>, %84, %cst_46 [1] : vector<8x16xf32> to vector<8xf32>
    %86 = vector.shape_cast %85 : vector<8xf32> to vector<8x1xf32>
    %87 = vector.broadcast %86 : vector<8x1xf32> to vector<8x16xf32>
    %88 = arith.subf %84, %87 : vector<8x16xf32>
    %89 = math.exp %88 : vector<8x16xf32>
    %cst_47 = arith.constant dense<0.000000e+00> : vector<8xf32>
    %90 = vector.multi_reduction <add>, %89, %cst_47 [1] : vector<8x16xf32> to vector<8xf32>
    %91 = vector.shape_cast %90 : vector<8xf32> to vector<8x1xf32>
    %92 = tpu.reciprocal %91 {approx = true} : vector<8x1xf32> -> vector<8x1xf32>
    %93 = arith.mulf %91, %92 : vector<8x1xf32>
    %cst_48 = arith.constant 2.000000e+00 : f32
    %94 = vector.broadcast %cst_48 : f32 to vector<8x1xf32>
    %95 = arith.subf %94, %93 : vector<8x1xf32>
    %96 = arith.mulf %92, %95 : vector<8x1xf32>
    %97 = vector.broadcast %96 : vector<8x1xf32> to vector<8x16xf32>
    %98 = arith.mulf %89, %97 : vector<8x16xf32>
    %c0_49 = arith.constant 0 : index
    %c3 = arith.constant 3 : index
    %c0_50 = arith.constant 0 : index
    %c0_51 = arith.constant 0 : index
    %99 = vector.load %arg8[%c0_49, %c3, %c0_50, %c0_51] : memref<1x4x8x16xf32, #tpu.memory_space<vmem>>, vector<1x1x8x16xf32>
    %100 = vector.shape_cast %99 : vector<1x1x8x16xf32> to vector<8x16xf32>
    %101 = vector.shape_cast %98 : vector<8x16xf32> to vector<1x1x8x16xf32>
    tpu.vector_store %arg8[%c0_49, %c3, %c0_50, %c0_51], %101 {strides = array<i32>} : memref<1x4x8x16xf32, #tpu.memory_space<vmem>>, vector<1x1x8x16xf32>,
    %cst_52 = arith.constant dense<0.000000e+00> : vector<8x16xf32>
    %102 = tpu.matmul %98, %83, %cst_52 {dimension_numbers = #tpu.dot_dimension_numbers<[1], [0], [0], [1], [0, 0, 1, 1], [], []>} : vector<8x16xf32>, vector<16x16xf32>, vector<8x16xf32> -> vector<8x16xf32>
    %c0_53 = arith.constant 0 : index
    %c48_54 = arith.constant 48 : index
    %103 = vector.load %arg10[%c0_53, %c48_54] : memref<8x64xf32, #tpu.memory_space<vmem>>, vector<8x16xf32>
    tpu.vector_store %arg10[%c0_53, %c48_54], %102 {strides = array<i32>} : memref<8x64xf32, #tpu.memory_space<vmem>>, vector<8x16xf32>,
    %c0_55 = arith.constant 0 : index
    %c0_56 = arith.constant 0 : index
    %104 = vector.load %arg10[%c0_55, %c0_56] : memref<8x64xf32, #tpu.memory_space<vmem>>, vector<8x64xf32>
    %c0_57 = arith.constant 0 : index
    %c0_58 = arith.constant 0 : index
    %105 = vector.load %arg6[%c0_57, %c0_58] : memref<64x64xf32, #tpu.memory_space<vmem>>, vector<64x64xf32>
    %cst_59 = arith.constant dense<0.000000e+00> : vector<8x64xf32>
    %106 = tpu.matmul %104, %105, %cst_59 {dimension_numbers = #tpu.dot_dimension_numbers<[1], [0], [0], [1], [0, 0, 1, 1], [], []>} : vector<8x64xf32>, vector<64x64xf32>, vector<8x64xf32> -> vector<8x64xf32>
    %c0_60 = arith.constant 0 : index
    %c0_61 = arith.constant 0 : index
    %c0_62 = arith.constant 0 : index
    %107 = vector.load %arg7[%c0_60, %c0_61, %c0_62] : memref<1x8x64xf32, #tpu.memory_space<vmem>>, vector<1x8x64xf32>
    %108 = vector.shape_cast %107 : vector<1x8x64xf32> to vector<8x64xf32>
    %109 = vector.shape_cast %106 : vector<8x64xf32> to vector<1x8x64xf32>
    tpu.vector_store %arg7[%c0_60, %c0_61, %c0_62], %109 {strides = array<i32>} : memref<1x8x64xf32, #tpu.memory_space<vmem>>, vector<1x8x64xf32>,
    return
  }
  func.func @transform_0(%arg0: i32, %arg1: i32) -> (i32, i32, i32) {
    %c0_i32 = arith.constant 0 : i32
    %c0_i32_0 = arith.constant 0 : i32
    %c0_i32_1 = arith.constant 0 : i32
    return %arg0, %c0_i32, %c0_i32_0 : i32, i32, i32
  }
  func.func @transform_1(%arg0: i32, %arg1: i32) -> (i32, i32, i32) {
    %c0_i32 = arith.constant 0 : i32
    %c0_i32_0 = arith.constant 0 : i32
    %c0_i32_1 = arith.constant 0 : i32
    return %arg0, %c0_i32, %c0_i32_0 : i32, i32, i32
  }
  func.func @transform_2(%arg0: i32, %arg1: i32) -> (i32, i32) {
    %c0_i32 = arith.constant 0 : i32
    %c0_i32_0 = arith.constant 0 : i32
    %c0_i32_1 = arith.constant 0 : i32
    return %c0_i32, %c0_i32_0 : i32, i32
  }
  func.func @transform_3(%arg0: i32, %arg1: i32) -> (i32, i32) {
    %c0_i32 = arith.constant 0 : i32
    %c0_i32_0 = arith.constant 0 : i32
    %c0_i32_1 = arith.constant 0 : i32
    return %c0_i32, %c0_i32_0 : i32, i32
  }
  func.func @transform_4(%arg0: i32, %arg1: i32) -> (i32, i32) {
    %c0_i32 = arith.constant 0 : i32
    %c0_i32_0 = arith.constant 0 : i32
    %c0_i32_1 = arith.constant 0 : i32
    return %c0_i32, %c0_i32_0 : i32, i32
  }
  func.func @transform_5(%arg0: i32, %arg1: i32) -> (i32, i32, i32) {
    %c0_i32 = arith.constant 0 : i32
    %c0_i32_0 = arith.constant 0 : i32
    return %arg0, %arg1, %c0_i32 : i32, i32, i32
  }
  func.func @transform_6(%arg0: i32, %arg1: i32) -> (i32, i32, i32, i32) {
    %c0_i32 = arith.constant 0 : i32
    %c0_i32_0 = arith.constant 0 : i32
    %c0_i32_1 = arith.constant 0 : i32
    return %arg0, %c0_i32, %arg1, %c0_i32_0 : i32, i32, i32, i32
  }
}

</mosaic_0001>

<bundles_post_ra>
// kernel: tpu_custom_call.1
= control target key start
LH: loop header
LB: loop body
LE: loop exit
PB: predicated region body
PF: predicated region fallthrough
CT: control target
= control target key end

     0   :  { %s1810_s0 = inlined_call_operand.hbm [shape: f32[2,8,64], index: 0, kind: input, shape index: {}]   ;;  %s1811_s1 = inlined_call_operand.hbm [shape: f32[2,8,64], index: 1, kind: input, shape index: {}]   ;;  %s1812_s2 = inlined_call_operand.hbm [shape: f32[64,64], index: 2, kind: input, shape index: {}]   ;;  %s1813_s3 = inlined_call_operand.hbm [shape: f32[64,128], index: 3, kind: input, shape index: {}]   ;;  %s1814_s4 = inlined_call_operand.hbm [shape: f32[64,64], index: 4, kind: input, shape index: {}]   ;;  %s1815_s5 = inlined_call_operand.hbm [shape: f32[2,8,64], index: 5, kind: output, shape index: {0}]   ;;  %s1816_s6 = inlined_call_operand.hbm [shape: f32[2,4,8,16], index: 6, kind: output, shape index: {1}]  }
   0x1   :  { %1825 = sst [smem:[#allocation27_spill]] %s1813_s3 }
   0x2   :  { %12 = vsyncpa [#allocation5], 0 }
   0x3   :  { %13 = vsyncpa [#allocation8], 0 }
   0x4   :  { %14 = vsyncpa [#allocation11], 0 }
   0x5   :  { %15 = vsyncpa [#allocation6], 0 }
   0x6   :  { %17 = vsyncpa [#allocation6 + $0x1], 0 }
   0x7   :  { %18 = vsyncpa [#allocation15], 0 }
   0x8   :  { %20 = vsyncpa [#allocation15 + $0x1], 0  ;;  %s1539_s21 = smov 0   ;;  %s1541_s22 = smov 0  }
   0x9   :  { %s1543_s23 = smov 0   ;;  %s1545_s24 = smov 0  }
   0xa   :  { %s1547_s25 = smov 0   ;;  %s1549_s26 = smov 0  }
   0xb LB: > { %1826 = sst [smem:[#allocation22_spill]] %s1474_s23  ;;  %s1015_s27 = sadd.s32 4294967295, %s1486_s26   ;;  %s1486_s26 = sphi %s1549_s26, %s26_s26   ;;  %s1482_s25 = sphi %s1547_s25, %s1846_s25   ;;  %s1478_s24 = sphi %s1545_s24, %s1845_s24   ;;  %s1474_s23 = sphi %s1543_s23, %s1844_s23   ;;  %s1470_s22 = sphi %s1541_s22, %s1848_s22   ;;  %s1466_s21 = sphi %s1539_s21, %s1847_s21  }
   0xc   : > { %1827 = sst [smem:[#allocation23_spill]] %s1482_s25  ;;  %s1016_s28 = sadd.s32 4294967294, %s1486_s26  }
   0xd   : > { %s38_s29 = sadd.s32 1, %s1482_s25  ;;  %s45_s30 = sadd.s32 1, %s1474_s23 }
   0xe   : > { %p40_p0 = scmp.ge.s32.totalorder %s38_s29, 2  ;;  %p58_p1 = scmp.ne.s32.totalorder %s1470_s22, %s1466_s21 }
   0xf   : > { %p1575_p2 = scmp.eq.s32.totalorder %s1015_s27, 0  ;;  %p172_p3 = scmp.ne.s32.totalorder %s1474_s23, %s1470_s22 }
  0x10   : > { %s1850_s29 = smov (%p40_p0, %s38_s29), 0  ;;  %p173_p5 = scmp.eq.s32.totalorder %s1015_s27, 1 }
  0x11   : > { %1829 = sst [smem:[#allocation24_spill]] %s1850_s29  ;;  %p1585_p4 = por %p1575_p2, %p58_p1 }
  0x12   : > { %s42_s9 = ssub.s32 %s1482_s25, %s1850_s29  ;;  %p179_p6 = scmp.eq.s32.totalorder %s1016_s28, 1 }
  0x13   : > { %p43_p7 = scmp.eq.s32.totalorder %s42_s9, 0  ;;  %p1591_p8 = por %p173_p5, %p172_p3 }
  0x14   : > { %p1595_p9 = por %p179_p6, %p58_p1  ;;  %p1017_p10 = scmp.ge.s32.totalorder %s1486_s26, 1 }
  0x15   : > { %s1601_s12 = scalar_select %p43_p7, %s1474_s23, %s45_s30  }
  0x16   : > { %s1832_s11 = scalar_select %p1595_p9, 1, 0 }
  0x17   : > { %1834 = sst [smem:[#allocation26_spill]] %s1601_s12  ;;  %p214_p11 = scmp.lt.s32.totalorder %s1486_s26, 3 }
  0x18   : > { %1833 = sst [smem:[#allocation25_spill]] %s1832_s11  ;;  %s1605_s13 = sshll.u32 %s1478_s24, 3 }
  0x19   : > { %s240_s16 = scalar_lea.hbm %s1811_s1, %s1605_s13  ;;  %p1611_p12 = pnand %p1017_p10, %p214_p11 }
  0x1a   : > { %s242_s18 = sshll.u32 %s240_s16, 4  ;;  %s1488_s19 = smov [#allocation7]   ;;  %s243_s18 = int_to_ptr.hbm [resolvable:$true] %s242_s18 }
  0x1b   : > { %s244_s20 = sshll.u32 %s1488_s19, 4  ;;  %p1080_p13 = pneg %p1611_p12  ;;  %s245_s20 = int_to_ptr.vmem [resolvable:$true] %s244_s20 }
  0x1c   : > { %s1838_s3 = sld [smem:[#allocation27_spill]]  ;;  %s1210_s15 = sshra.s32 %s243_s18, 4  ;;  %s1211_s15 = int_to_ptr.hbm [resolvable:$true] %s1210_s15 }
  0x1d   : > { %p1619_p0 = pnand %p1080_p13, %p1585_p4  ;;  %p1625_p1 = pnand %p1080_p13, %p1575_p2 }
  0x1e   : > { %s1212_s16 = scalar_lea.hbm %s1211_s15, 8  ;;  %s1217_s25 = scalar_lea.hbm %s1811_s1, 16 }
  0x1f   : > { %p1213_p3 = scmp.ne.s32.totalorder %s1211_s15, %s1212_s16  ;;  %p1214_p5 = pneg %p1619_p0 }
  0x20   : > { %p1218_p10 = scmp.lt.s32.totalorder %s1211_s15, %s1811_s1  ;;  %p1219_p11 = scmp.lt.s32.totalorder %s1217_s25, %s1212_s16 }
  0x21   : > { %p1215_p6 = pnand %p1214_p5, %p1213_p3 }
  0x22   : > { %s267_s14 = sshll.u32 %s1838_s3, 4  ;;  %p1220_p13 = por %p1219_p11, %p1218_p10  ;;  %s268_s14 = int_to_ptr.hbm [resolvable:$true] %s267_s14 }
  0x23   : > { %p1216_p7 = pneg %p1215_p6 }
  0x25   : > { %p1221_p9 = pnand %p1220_p13, %p1216_p7 }
  0x27   : > { %1224 = shalt.err (!%p1221_p9)
}
  0x28   : > { %1086 = dma.hbm_to_vmem [thread:$0]  (!%p1619_p0), %s243_s18, 128, %s245_s20, [#allocation8]  }
  0x29   : > { %s1489_s30 = smov [#allocation10]   ;;  %s226_s29 = scalar_lea.hbm %s1810_s0, %s1605_s13 }
  0x2a   : > { %s269_s9 = sshll.u32 %s1489_s30, 4  ;;  %s228_s23 = sshll.u32 %s226_s29, 4  ;;  %s270_s9 = int_to_ptr.vmem [resolvable:$true] %s269_s9  ;;  %s229_s23 = int_to_ptr.hbm [resolvable:$true] %s228_s23 }
  0x2b   : > { %s1821_s12 = smov 128   ;;  %s1823_s25 = smov 8  }
  0x2c   : > { %1092 = dma.hbm_to_vmem [thread:$0]  (!%p1625_p1), %s268_s14, 1024, %s270_s9, [#allocation11], %s1821_s12, %s1821_s12, %s1823_s25  }
  0x2d   : > { %s1492_s15 = smov [#allocation4]   ;;  %s253_s19 = sshll.u32 %s1812_s2, 4  ;;  %s254_s19 = int_to_ptr.hbm [resolvable:$true] %s253_s19 }
  0x2e   : > { %s230_s18 = sshll.u32 %s1492_s15, 4  ;;  %s1270_s3 = sshra.s32 %s229_s23, 4  ;;  %s231_s18 = int_to_ptr.vmem [resolvable:$true] %s230_s18  ;;  %s1271_s3 = int_to_ptr.hbm [resolvable:$true] %s1270_s3 }
  0x2f   : > { %s1272_s11 = scalar_lea.hbm %s1271_s3, 8  ;;  %s1277_s14 = scalar_lea.hbm %s1810_s0, 16 }
  0x30   : > { %p1273_p9 = scmp.ne.s32.totalorder %s1271_s3, %s1272_s11  ;;  %p1278_p7 = scmp.lt.s32.totalorder %s1271_s3, %s1810_s0 }
  0x31   : > { %p1279_p10 = scmp.lt.s32.totalorder %s1277_s14, %s1272_s11 }
  0x32   : > { %p1275_p3 = pnand %p1273_p9, %p1214_p5 }
  0x33   : > { %p1280_p11 = por %p1279_p10, %p1278_p7 }
  0x34   : > { %p1276_p6 = pneg %p1275_p3 }
  0x36   : > { %p1281_p13 = pnand %p1280_p11, %p1276_p6 }
  0x38   : > { %1284 = shalt.err (!%p1281_p13)
}
  0x39   : > { %1083 = dma.hbm_to_vmem [thread:$0]  (!%p1619_p0), %s229_s23, 128, %s231_s18, [#allocation5]  }
  0x3a   : > { %s281_s12 = sshll.u32 %s1814_s4, 4  ;;  %s1493_s25 = smov [#allocation9]   ;;  %s282_s12 = int_to_ptr.hbm [resolvable:$true] %s281_s12 }
  0x3b   : > { %s255_s30 = sshll.u32 %s1493_s25, 4  ;;  %s1839_s29 = smov 8   ;;  %s256_s30 = int_to_ptr.vmem [resolvable:$true] %s255_s30 }
  0x3c   : > { %s1840_s3 = smov 128   ;;  %s1494_s11 = smov [#allocation12]  }
  0x3d   : > { %1089 = dma.hbm_to_vmem [thread:$0]  (!%p1625_p1), %s254_s19, 1024, %s256_s30, [#allocation8], %s1840_s3, %s1840_s3, %s1839_s29  }
  0x3e   : > { %s283_s14 = sshll.u32 %s1494_s11, 4  ;;  %299 = sbr.rel (%p1611_p12) target bundleno = 1417 (0x589), region = 40  ;;  %s284_s14 = int_to_ptr.vmem [resolvable:$true] %s283_s14 }
  0x3f   : > { %1095 = dma.hbm_to_vmem [thread:$0]  (!%p1625_p1), %s282_s12, 1024, %s284_s14, [#allocation11], %s1840_s3, %s1840_s3, %s1839_s29  }
  0x43   : > { %1441 = dma.done.wait (%p1585_p4), [#allocation5], 128  }
  0x44   : > { %1443 = vsyncadd (%p1585_p4), [#allocation5], 4294967168 }
  0x45   : > { %1445 = dma.done.wait (%p1585_p4), [#allocation8], 128  }
  0x46   : > { %1447 = vsyncadd (%p1585_p4), [#allocation8], 4294967168 }
  0x47   : > { %1449 = dma.done.wait (%p1575_p2), [#allocation8], 1024  }
  0x48   : > { %1451 = vsyncadd (%p1575_p2), [#allocation8], 4294966272 }
  0x49   : > { %1453 = dma.done.wait (%p1575_p2), [#allocation11], 2048  }
  0x4a   : > { %1455 = vsyncadd (%p1575_p2), [#allocation11], 4294965248  ;;  %v362_v0 = vld [vmem:[#allocation10 + $0x38] sm:$0xff]  ;;  %v361_v2 = vld [vmem:[#allocation10 + $0x30] sm:$0xff]  ;;  %vm363_vm0 = vcmask 523264   ;;  %vm459_vm1 = vcmask 130048  }
  0x4b   : > { %v431_v1 = vld [vmem:[#allocation9 + $0x38] sm:$0xff]  ;;  %375 = vmatpush.msra.mxu0 %v362_v0  ;;  %408 = vmatpush.msra.mxu1 %v362_v0  ;;  %v430_v3 = vld [vmem:[#allocation9 + $0x30] sm:$0xff]  ;;  %v360_v4 = vld [vmem:[#allocation10 + $0x28] sm:$0xff]  ;;  %s1495_s7 = smov 96   ;;  %s1496_s8 = smov 64   ;;  %vm619_vm2 = vcmask 261248  }
  0x4c   : > { %444 = vmatpush.msra.mxu2 %v431_v1  ;;  %v429_v5 = vld [vmem:[#allocation9 + $0x28] sm:$0xff]  ;;  %v359_v6 = vld [vmem:[#allocation10 + $0x20] sm:$0xff]  ;;  %v358_v8 = vld [vmem:[#allocation10 + $0x18] sm:$0xff]  ;;  %s1497_s17 = smov 112   ;;  %s1498_s27 = smov 80   ;;  %vm706_vm3 = vcmask 392448  }
  0x4d   : > { %376 = vmatpush.msra.mxu0 %v361_v2  ;;  %409 = vmatpush.msra.mxu1 %v361_v2  ;;  %v428_v7 = vld [vmem:[#allocation9 + $0x20] sm:$0xff]  ;;  %v427_v9 = vld [vmem:[#allocation9 + $0x18] sm:$0xff]  ;;  %v357_v10 = vld [vmem:[#allocation10 + $0x10] sm:$0xff]  ;;  %s1499_s28 = smov 48   ;;  %s1727_s23 = sand.u32 1, %s1470_s22   ;;  %vm793_vm4 = vcmask 523648  }
  0x4e   : > { %445 = vmatpush.msra.mxu2 %v430_v3  ;;  %v426_v11 = vld [vmem:[#allocation9 + $0x10] sm:$0xff]  ;;  %v356_v12 = vld [vmem:[#allocation10 + $0x8] sm:$0xff]  ;;  %v355_v14 = vld [vmem:[#allocation10] sm:$0xff]  ;;  %s1028_s12 = sshll.u32 %s1727_s23, 5  ;;  %s1500_s18 = smov 16  }
  0x4f   : > { %377 = vmatpush.msra.mxu0 %v360_v4  ;;  %410 = vmatpush.msra.mxu1 %v360_v4  ;;  %v425_v13 = vld [vmem:[#allocation9 + $0x8] sm:$0xff]  ;;  %v424_v15 = vld [vmem:[#allocation9] sm:$0xff]  ;;  %v354_v16 = vld [vmem:[#allocation4] sm:$0xff]  ;;  %s1731_s25 = scalar_lea.vmem [#allocation14], %s1028_s12  ;;  %s1501_s19 = smov 32  }
  0x50   : > { %446 = vmatpush.msra.mxu2 %v429_v5  ;;  %v388_v17 = vld [vmem:[#allocation7] sm:$0xff]  ;;  %s1059_s9 = sshll.u32 %s1478_s24, 5  ;;  %s862_s15 = sshll.u32 %s1731_s25, 4  ;;  %s863_s15 = int_to_ptr.vmem [resolvable:$true] %s862_s15 }
  0x51   : > { %378 = vmatpush.msra.mxu0 %v359_v6  ;;  %411 = vmatpush.msra.mxu1 %v359_v6  ;;  %s861_s30 = scalar_lea.hbm %s1816_s6, %s1059_s9  ;;  %s834_s3 = scalar_lea.sflag [#allocation15], %s1727_s23 }
  0x52   : > { %447 = vmatpush.msra.mxu2 %v428_v7  ;;  %s864_s29 = sshll.u32 %s861_s30, 4  ;;  %s1380_s24 = scalar_lea.hbm %s1816_s6, 64  ;;  %s865_s29 = int_to_ptr.hbm [resolvable:$true] %s864_s29 }
  0x53   : > { %379 = vmatpush.msra.mxu0 %v358_v8  ;;  %412 = vmatpush.msra.mxu1 %v358_v8  ;;  %s1374_s11 = sshra.s32 %s865_s29, 4  ;;  %s1375_s11 = int_to_ptr.hbm [resolvable:$true] %s1374_s11 }
  0x54   : > { %448 = vmatpush.msra.mxu2 %v427_v9  ;;  %s1376_s14 = scalar_lea.hbm %s1375_s11, 32  ;;  %p1381_p0 = scmp.lt.s32.totalorder %s1375_s11, %s1816_s6 }
  0x55   : > { %380 = vmatpush.msra.mxu0 %v357_v10  ;;  %413 = vmatpush.msra.mxu1 %v357_v10  ;;  %p1377_p2 = scmp.ne.s32.totalorder %s1375_s11, %s1376_s14  ;;  %p1382_p1 = scmp.lt.s32.totalorder %s1380_s24, %s1376_s14 }
  0x56   : > { %449 = vmatpush.msra.mxu2 %v426_v11 }
  0x57   : > { %381 = vmatpush.msra.mxu0 %v356_v12  ;;  %414 = vmatpush.msra.mxu1 %v356_v12  ;;  %p1378_p4 = pnand %p1377_p2, %p1591_p8  ;;  %p1383_p5 = por %p1382_p1, %p1381_p0 }
  0x58   : > { %450 = vmatpush.msra.mxu2 %v425_v13 }
  0x59   : > { %382 = vmatpush.msra.mxu0 %v355_v14  ;;  %415 = vmatpush.msra.mxu1 %v355_v14  ;;  %p1379_p12 = pneg %p1378_p4 }
  0x5a   : > { %451 = vmatpush.msra.mxu2 %v424_v15  ;;  %1029 = vmatmul.msk.f32.vlgmr.msra.gmra.mxu0 %vm363_vm0, %v354_v16 }
  0x5b   : > { %1030 = vmatmul.msk.f32.vlgmr.msra.gmra.mxu1 %vm363_vm0, %v388_v17  ;;  %1031 = vmatmul.msk.f32.vlgmr.msra.gmra.mxu2 %vm363_vm0, %v354_v16  ;;  %p1384_p9 = pnand %p1383_p5, %p1379_p12 }
  0xd7   : > { %v384_v18 = vpop.f32.mrf.mxu0 }
  0xd8   : > { %v417_v19 = vpop.f32.mrf.mxu1  ;;  %627 = vrot.lane.b32.xlu2 %v384_v18, %s1495_s7 }
  0xd9   : > { %1032 = vmatpush.xpose.msk.msra.mxu3 %vm459_vm1, %v417_v19  ;;  %v1704_v20 = vpack.i.bf16 %v384_v18, %v417_v19 }
  0xdb   : > { %1175 = vrot.lane.b32.xlu1 %v1704_v20, %s1496_s8 }
  0xdd   : > { %1033 = vmatpush.xpose.msk.msra.mxu3 %vm459_vm1, %v384_v18 }
  0xde   : > { %v453_v21 = vpop.f32.mrf.mxu2 }
  0xdf   : > { %v456_v22 = vmul.f32 0.25, %v453_v21 }
  0xe0   : > { %542 = vrot.lane.b32.xlu2 %v417_v19, %s1497_s17 }
  0xe1   : > { %1034 = vmatmul.msk.f32.vlgmr.msra.gmra.mxu3 %vm459_vm1, %v456_v22 }
  0xe3   : > { %629 = vrot.lane.b32.xlu1 %v417_v19, %s1495_s7 }
  0xe8   : > { %536 = vrot.lane.b32.xlu2 %v456_v22, %s1497_s17 }
  0xeb   : > { %540 = vrot.lane.b32.xlu1 %v384_v18, %s1497_s17 }
  0xf0   : > { %714 = vrot.lane.b32.xlu2 %v384_v18, %s1498_s27 }
  0xf3   : > { %716 = vrot.lane.b32.xlu1 %v417_v19, %s1498_s27 }
  0xfb   : > { %710 = vrot.lane.b32.xlu1 %v456_v22, %s1498_s27 }
 0x132   : > { %v628_v23 = vpop.permute.xlu2 %627 }
 0x13a   : > { %v543_v24 = vpop.permute.xlu2 %542 }
 0x13b   : > { %1036 = vmatpush.xpose.msk.msrb.mxu0 %vm459_vm1, %v543_v24 }
 0x142   : > { %v537_v30 = vpop.permute.xlu2 %536 }
 0x14a   : > { %v715_v34 = vpop.permute.xlu2 %714 }
 0x14d   : > { %v1176_v25 = vpop.permute.xlu1 %1175 }
 0x14e   : > { %v1177_v26 = vunpack.i.l.bf16 %v1176_v25  ;;  %v1178_v27 = vunpack.i.h.bf16 %v1176_v25 }
 0x150   : > { %527 = vmatpush.msrb.mxu3 %v1177_v26 }
 0x152   : > { %528 = vmatpush.msrb.mxu3 %v1178_v27 }
 0x155   : > { %v630_v28 = vpop.permute.xlu1 %629 }
 0x156   : > { %1041 = vmatpush.xpose.msk.msra.mxu3 %vm459_vm1, %v630_v28 }
 0x15a   : > { %1042 = vmatpush.xpose.msk.msra.mxu3 %vm459_vm1, %v628_v23 }
 0x15d   : > { %v541_v29 = vpop.permute.xlu1 %540 }
 0x15e   : > { %1037 = vmatpush.xpose.msk.msrb.mxu0 %vm459_vm1, %v541_v29 }
 0x161   : > { %1038 = vmatmul.msk.f32.vlgmr.msrb.gmra.mxu0 %vm459_vm1, %v537_v30 }
 0x164   : > { %v486_v31 = vpop.f32.mrf.mxu3 }
 0x165   : > { %v717_v32 = vpop.permute.xlu1 %716  ;;  %v489_v33 = vsel %vm459_vm1, %v486_v31, -inf }
 0x166   : > { %1046 = vmatpush.xpose.msk.msra.mxu0 %vm459_vm1, %v717_v32  ;;  %490 = vmax.xlane.f32.xlu0 %v489_v33 }
 0x16a   : > { %1047 = vmatpush.xpose.msk.msra.mxu0 %vm459_vm1, %v715_v34 }
 0x16d   : > { %v711_v35 = vpop.permute.xlu1 %710 }
 0x16e   : > { %1048 = vmatmul.msk.f32.vlgmr.msra.gmra.mxu0 %vm459_vm1, %v711_v35 }
 0x1d9   : > { %v491_v36 = vpop.xlane.xlu0 %490 }
 0x1da   : > { %v492_v37 = vsub.f32 %v486_v31, %v491_v36  ;;  %v803_v36 = vld [vmem:[#allocation12 + $0x38] sm:$0xff] }
 0x1db   : > { %815 = vmatpush.msrb.mxu2 %v803_v36 }
 0x1dc   : > { %v493_v38 = vmul.f32 1.442695, %v492_v37  ;;  %v802_v37 = vld [vmem:[#allocation12 + $0x30] sm:$0xff] }
 0x1dd   : > { %816 = vmatpush.msrb.mxu2 %v802_v37 }
 0x1de   : > { %1194 = vpow2.f32 %v493_v38  ;;  %v567_v39 = vpop.f32.mrf.mxu0  ;;  %v801_v38 = vld [vmem:[#allocation12 + $0x28] sm:$0xff] }
 0x1df   : > { %v570_v40 = vsel %vm459_vm1, %v567_v39, -inf  ;;  %817 = vmatpush.msrb.mxu2 %v801_v38 }
 0x1e0   : > { %571 = vmax.xlane.f32.xlu2 %v570_v40  ;;  %v800_v40 = vld [vmem:[#allocation12 + $0x20] sm:$0xff] }
 0x1e1   : > { %818 = vmatpush.msrb.mxu2 %v800_v40 }
 0x1e4   : > { %v1195_v41 = vpop.eup %1194 }
 0x1e5   : > { %v495_v42 = vsel %vm459_vm1, %v1195_v41, 0.0 }
 0x1e6   : > { %496 = vadd.xlane.f32.xlu0 %v495_v42  ;;  %v798_v42 = vld [vmem:[#allocation12 + $0x10] sm:$0xff] }
 0x1eb   : > { %v741_v43 = vpop.f32.mrf.mxu0 }
 0x1ec   : > { %v744_v44 = vsel %vm459_vm1, %v741_v43, -inf }
 0x1ed   : > { %745 = vmax.xlane.f32.xlu1 %v744_v44  ;;  %v796_v44 = vld [vmem:[#allocation12] sm:$0xff] }
 0x1fa   : > { %623 = vrot.lane.b32.xlu0 %v456_v22, %s1495_s7 }
 0x206   : > { %1180 = vrot.lane.b32.xlu1 %v1704_v20, %s1499_s28 }
 0x253   : > { %v572_v45 = vpop.xlane.xlu2 %571 }
 0x254   : > { %v573_v46 = vsub.f32 %v567_v39, %v572_v45 }
 0x256   : > { %v574_v47 = vmul.f32 1.442695, %v573_v46 }
 0x258   : > { %1196 = vpow2.f32 %v574_v47 }
 0x259   : > { %v497_v48 = vpop.xlane.xlu0 %496 }
 0x25a   : > { %1198 = vrcp.f32 %v497_v48 }
 0x25e   : > { %v1197_v49 = vpop.eup %1196 }
 0x25f   : > { %v576_v50 = vsel %vm459_vm1, %v1197_v49, 0.0 }
 0x260   : > { %v1199_v51 = vpop.eup %1198  ;;  %577 = vadd.xlane.f32.xlu2 %v576_v50  ;;  %v746_v52 = vpop.xlane.xlu1 %745 }
 0x261   : > { %v499_v53 = vmul.f32 %v1199_v51, %v497_v48  ;;  %v747_v54 = vsub.f32 %v741_v43, %v746_v52  ;;  %v797_v43 = vld [vmem:[#allocation12 + $0x8] sm:$0xff] }
 0x263   : > { %v500_v55 = vsub.f32 2.0, %v499_v53  ;;  %v748_v56 = vmul.f32 1.442695, %v747_v54 }
 0x265   : > { %v501_v57 = vmul.f32 %v1199_v51, %v500_v55  ;;  %1200 = vpow2.f32 %v748_v56 }
 0x267   : > { %v502_v58 = vmul.f32 %v1195_v41, %v501_v57  ;;  %v799_v41 = vld [vmem:[#allocation12 + $0x18] sm:$0xff] }
 0x268   : > { %819 = vmatpush.msrb.mxu2 %v799_v41 }
 0x269   : > { %1035 = vmatmul.msk.f32.vlgmr.msrb.gmra.mxu3 %vm459_vm1, %v502_v58  ;;  %503 = vst.msk [vmem:[%s1731_s25] sm:$0xff] %vm459_vm1, %v502_v58 }
 0x26a   : > { %820 = vmatpush.msrb.mxu2 %v798_v42 }
 0x26b   : > { %v1201_v59 = vpop.eup %1200 }
 0x26c   : > { %v750_v60 = vsel %vm459_vm1, %v1201_v59, 0.0  ;;  %v624_v61 = vpop.permute.xlu0 %623  ;;  %821 = vmatpush.msrb.mxu2 %v797_v43 }
 0x26d   : > { %751 = vadd.xlane.f32.xlu2 %v750_v60 }
 0x26e   : > { %822 = vmatpush.msrb.mxu2 %v796_v44 }
 0x271   : > { %1043 = vmatmul.msk.f32.vlgmr.msra.gmra.mxu3 %vm459_vm1, %v624_v61 }
 0x278   : > { %v1181_v62 = vpop.permute.xlu1 %1180 }
 0x279   : > { %v1182_v63 = vunpack.i.l.bf16 %v1181_v62  ;;  %v1183_v0 = vunpack.i.h.bf16 %v1181_v62 }
 0x27b   : > { %609 = vmatpush.msrb.mxu1 %v1182_v63 }
 0x27d   : > { %610 = vmatpush.msrb.mxu1 %v1183_v0 }
 0x285   : > { %1190 = vrot.lane.b32.xlu2 %v1704_v20, %s1500_s18 }
 0x2d3   : > { %v578_v1 = vpop.xlane.xlu2 %577 }
 0x2d4   : > { %1202 = vrcp.f32 %v578_v1 }
 0x2da   : > { %v1203_v2 = vpop.eup %1202 }
 0x2db   : > { %v580_v3 = vmul.f32 %v1203_v2, %v578_v1 }
 0x2dd   : > { %v581_v4 = vsub.f32 2.0, %v580_v3 }
 0x2df   : > { %v582_v5 = vmul.f32 %v1203_v2, %v581_v4 }
 0x2e0   : > { %v752_v6 = vpop.xlane.xlu2 %751 }
 0x2e1   : > { %v583_v7 = vmul.f32 %v1197_v49, %v582_v5  ;;  %1204 = vrcp.f32 %v752_v6 }
 0x2e3   : > { %1040 = vmatmul.msk.f32.vlgmr.msrb.gmra.mxu1 %vm459_vm1, %v583_v7  ;;  %1039 = vst.msk [vmem:[%s1731_s25 + $0x8] sm:$0xff] %vm459_vm1, %v583_v7 }
 0x2e7   : > { %v1205_v8 = vpop.eup %1204 }
 0x2e8   : > { %v754_v9 = vmul.f32 %v1205_v8, %v752_v6  ;;  %v1191_v10 = vpop.permute.xlu2 %1190 }
 0x2e9   : > { %v1192_v11 = vunpack.i.l.bf16 %v1191_v10  ;;  %v1193_v13 = vunpack.i.h.bf16 %v1191_v10 }
 0x2ea   : > { %v755_v12 = vsub.f32 2.0, %v754_v9 }
 0x2eb   : > { %783 = vmatpush.msra.mxu1 %v1192_v11 }
 0x2ec   : > { %v756_v14 = vmul.f32 %v1205_v8, %v755_v12  ;;  %v530_v15 = vpop.f32.mrf.mxu3 }
 0x2ed   : > { %533 = vst.msk [vmem:[#allocation3] sm:$0xff] %vm459_vm1, %v530_v15  ;;  %784 = vmatpush.msra.mxu1 %v1193_v13 }
 0x2ee   : > { %v757_v16 = vmul.f32 %v1201_v59, %v756_v14 }
 0x2f0   : > { %1050 = vmatmul.msk.f32.vlgmr.msra.gmra.mxu1 %vm459_vm1, %v757_v16  ;;  %1049 = vst.msk [vmem:[%s1731_s25 + $0x18] sm:$0xff] %vm459_vm1, %v757_v16 }
 0x2f4   : > { %v654_v17 = vpop.f32.mrf.mxu3 }
 0x2f5   : > { %v657_v18 = vsel %vm459_vm1, %v654_v17, -inf }
 0x2f6   : > { %658 = vmax.xlane.f32.xlu0 %v657_v18 }
 0x360   : > { %v612_v19 = vpop.f32.mrf.mxu1 }
 0x369   : > { %v659_v21 = vpop.xlane.xlu0 %658 }
 0x36a   : > { %v660_v22 = vsub.f32 %v654_v17, %v659_v21 }
 0x36c   : > { %v661_v23 = vmul.f32 1.442695, %v660_v22 }
 0x36d   : > { %v786_v24 = vpop.f32.mrf.mxu1 }
 0x36e   : > { %1206 = vpow2.f32 %v661_v23  ;;  %790 = vrot.lane.b32.xlu2 %v786_v24, %s1499_s28 }
 0x374   : > { %v1207_v25 = vpop.eup %1206 }
 0x375   : > { %v663_v26 = vsel %vm459_vm1, %v1207_v25, 0.0 }
 0x376   : > { %664 = vadd.xlane.f32.xlu0 %v663_v26 }
 0x38a   : > { %1185 = vrot.lane.b32.xlu0 %v1704_v20, %s1501_s19 }
 0x392   : > { %616 = vrot.lane.b32.xlu0 %v612_v19, %s1500_s18 }
 0x3c8   : > { %v791_v46 = vpop.permute.xlu2 %790 }
 0x3e9   : > { %v665_v27 = vpop.xlane.xlu0 %664 }
 0x3ea   : > { %1208 = vrcp.f32 %v665_v27 }
 0x3f0   : > { %v1209_v28 = vpop.eup %1208 }
 0x3f1   : > { %v667_v29 = vmul.f32 %v1209_v28, %v665_v27 }
 0x3f3   : > { %v668_v30 = vsub.f32 2.0, %v667_v29 }
 0x3f5   : > { %v669_v31 = vmul.f32 %v1209_v28, %v668_v30 }
 0x3f7   : > { %v670_v32 = vmul.f32 %v1207_v25, %v669_v31 }
 0x3f9   : > { %1044 = vst.msk [vmem:[%s1731_s25 + $0x10] sm:$0xff] %vm459_vm1, %v670_v32 }
 0x3fc   : > { %v1186_v33 = vpop.permute.xlu0 %1185 }
 0x3fd   : > { %v1187_v34 = vunpack.i.l.bf16 %v1186_v33  ;;  %v1188_v35 = vunpack.i.h.bf16 %v1186_v33 }
 0x3ff   : > { %696 = vmatpush.msrb.mxu3 %v1187_v34 }
 0x401   : > { %697 = vmatpush.msrb.mxu3 %v1188_v35 }
 0x402   : > { %1045 = vmatmul.msk.f32.vlgmr.msrb.gmra.mxu3 %vm459_vm1, %v670_v32 }
 0x404   : > { %v617_v20 = vpop.permute.xlu0 %616 }
 0x405   : > { %620 = vst.msk [vmem:[#allocation3] sm:$0xff] %vm619_vm2, %v617_v20 }
 0x485   : > { %v699_v39 = vpop.f32.mrf.mxu3 }
 0x486   : > { %703 = vrot.lane.b32.xlu1 %v699_v39, %s1501_s19 }
 0x4f8   : > { %v704_v45 = vpop.permute.xlu1 %703 }
 0x4f9   : > { %707 = vst.msk [vmem:[#allocation3] sm:$0xff] %vm706_vm3, %v704_v45 }
 0x4fa   : > { %794 = vst.msk [vmem:[#allocation3] sm:$0xff] %vm793_vm4, %v791_v46 }
 0x501   : > { %v795_v47 = vld [vmem:[#allocation3] sm:$0xff] }
 0x502   : > { %1051 = vmatmul.msk.f32.vlgmr.msrb.gmra.mxu2 %vm363_vm0, %v795_v47 }
 0x503   : > { %1387 = shalt.err (!%p1384_p9)
}
 0x504   : > { %s1502_s28 = smov 128   ;;  %s1503_s12 = smov 8  }
 0x505   : > { %1077 = dma.vmem_to_hbm [thread:$0]  (%p1591_p8), %s863_s15, 512, %s865_s29, %s834_s3, %s1502_s28, %s1502_s28, %s1503_s12  }
 0x506   : > { %s1027_s25 = sshll.u32 %s1727_s23, 3  ;;  %s845_s9 = scalar_lea.hbm %s1815_s5, %s1605_s13 }
 0x507   : > { %s342_s20 = scalar_lea.vmem [#allocation13], %s1027_s25  ;;  %s849_s30 = sshll.u32 %s845_s9, 4  ;;  %s850_s30 = int_to_ptr.hbm [resolvable:$true] %s849_s30 }
 0x508   : > { %s847_s16 = sshll.u32 %s342_s20, 4  ;;  %s829_s11 = scalar_lea.sflag [#allocation6], %s1727_s23  ;;  %s848_s16 = int_to_ptr.vmem [resolvable:$true] %s847_s16 }
 0x509   : > { %s1402_s14 = sshra.s32 %s850_s30, 4  ;;  %s1408_s13 = scalar_lea.hbm %s1815_s5, 16  ;;  %s1403_s14 = int_to_ptr.hbm [resolvable:$true] %s1402_s14 }
 0x50a   : > { %s1404_s7 = scalar_lea.hbm %s1403_s14, 8  ;;  %p1409_p10 = scmp.lt.s32.totalorder %s1403_s14, %s1815_s5 }
 0x50b   : > { %p1405_p3 = scmp.ne.s32.totalorder %s1403_s14, %s1404_s7  ;;  %p1410_p11 = scmp.lt.s32.totalorder %s1408_s13, %s1404_s7 }
 0x50d   : > { %p1406_p6 = pnand %p1405_p3, %p1591_p8  ;;  %p1411_p13 = por %p1410_p11, %p1409_p10 }
 0x50f   : > { %p1407_p7 = pneg %p1406_p6 }
 0x511   : > { %p1412_p2 = pnand %p1411_p13, %p1407_p7 }
 0x585   : > { %v824_v48 = vpop.f32.mrf.mxu2 }
 0x586   : > { %827 = vst.msk [vmem:[%s342_s20] sm:$0xff] %vm363_vm0, %v824_v48 }
 0x587   : > { %1415 = shalt.err (!%p1412_p2)
}
 0x588   : > { %1076 = dma.vmem_to_hbm [thread:$0]  (%p1591_p8), %s848_s16, 128, %s850_s30, %s829_s11  }
 0x589 PF: > { %s1841_s23 = sld [smem:[#allocation25_spill]]  ;;  %p1109_p4 = scmp.ge.s32.totalorder %s1486_s26, 2 }
 0x58a   : > { %s879_s24 = sand.u32 1, %s1466_s21  }
 0x58b   : > { %s880_s17 = scalar_lea.sflag [#allocation6], %s879_s24 }
 0x58f   : > { %p1842_p12 = scmp.ne.s32.totalorder %s1841_s23, 0 }
 0x591   : > { %p1097_p0 = pnand %p1109_p4, %p1842_p12 }
 0x593   : > { %p1098_p1 = pneg %p1097_p0 }
 0x595   : > { %1457 = dma.done.wait (%p1098_p1), %s880_s17, 128  }
 0x596   : > { %1459 = vsyncadd (%p1098_p1), %s880_s17, 4294967168  ;;  %s890_s27 = scalar_lea.sflag [#allocation15], %s879_s24 }
 0x597   : > { %1461 = dma.done.wait (%p1098_p1), %s890_s27, 512  }
 0x598   : > { %1463 = vsyncadd (%p1098_p1), %s890_s27, 4294966784  ;;  %s26_s26 = sadd.s32 1, %s1486_s26   ;;  %s1843_s10 = sld [smem:[#allocation22_spill]] }
 0x599   : > { %p23_p5 = scmp.ge.s32.totalorder %s26_s26, 4   ;;  %s1844_s23 = sld [smem:[#allocation26_spill]] }
 0x59a   : > { %s1845_s24 = sld [smem:[#allocation23_spill]]  ;;  %s1847_s21 = smov %s1470_s22 }
 0x59b   : > { %s1846_s25 = sld [smem:[#allocation24_spill]]  ;;  %25 = sbr.rel (!%p23_p5) target bundleno = 11 (0xb), region = 120 }
 0x59e   : > { %s1848_s22 = smov %s1843_s10 }
 0x5a0   :  { %896 = vsyncpa [#allocation5], 1 }
 0x5a1   :  { %898 = vsyncpa [#allocation5 + $0x1], 1 }
 0x5a2   :  { %899 = vsyncpa [#allocation8], 1 }
 0x5a3   :  { %900 = vsyncpa [#allocation11], 1 }
 0x5a4   :  { %901 = vsyncpa [#allocation6], 1 }
 0x5a5   :  { %903 = vsyncpa [#allocation6 + $0x1], 1 }
 0x5a6   :  { %904 = vsyncpa [#allocation15], 1 }
 0x5a7   :  { %906 = vsyncpa [#allocation15 + $0x1], 1 }

</bundles_post_ra>
